<compile_context>
chip_gen: v5e
topology: v5e:2x2
jax: 0.10.0
libtpu: 0.0.40
codegen_flags: <defaults>
</compile_context>

<pallas_src>
import functools

import jax
import jax.numpy as jnp
from jax.experimental import pallas as pl
from jax.experimental.pallas import tpu as pltpu

Q_LEVEL = 6          # quantization levels used by Clamp_q_
_LANES = 512         # block width: multiple of 128 -> lane-dense, unmasked vst
_MAX_TM = 512        # rows per block: (512, 512) f32 = 1 MiB per buffer


def _round_up(x, m):
    return ((x + m - 1) // m) * m


def _clamp_q_kernel(q_level, min_val, max_val, x_ref, o_ref):
    x = x_ref[...].astype(jnp.float32)
    y = jnp.clip(x, min_val, max_val)
    # Quantization_: floor(x * q) / q  (true divide to match torch.div exactly)
    y = jnp.floor(y * q_level) / q_level
    o_ref[...] = y.astype(o_ref.dtype)


def clamp_q(x, q_level=Q_LEVEL, min_val=0.0, max_val=1.0):
    """Clamp_q_.forward: clamp to [min, max] then floor(x*q)/q, elementwise."""
    orig_shape = x.shape
    dtype = x.dtype
    total = x.size

    # Lay the flattened tensor out as (rows, 512); pad rows to a legal tile.
    rows = -(-total // _LANES)            # ceil-div
    rows8 = _round_up(max(rows, 1), 8)
    if rows8 >= _MAX_TM:
        tm = _MAX_TM
        rows_pad = _round_up(rows8, _MAX_TM)
    else:
        tm = rows8                        # single full-extent block
        rows_pad = rows8
    grid = (rows_pad // tm,)

    xf = x.reshape(-1)
    pad = rows_pad * _LANES - total
    if pad:
        xf = jnp.pad(xf, (0, pad))
    x2 = xf.reshape(rows_pad, _LANES)

    out = pl.pallas_call(
        functools.partial(_clamp_q_kernel, float(q_level), float(min_val),
                          float(max_val)),
        out_shape=jax.ShapeDtypeStruct((rows_pad, _LANES), dtype),
        grid=grid,
        in_specs=[pl.BlockSpec((tm, _LANES), lambda i: (i, 0))],
        out_specs=pl.BlockSpec((tm, _LANES), lambda i: (i, 0)),
        compiler_params=pltpu.CompilerParams(
            dimension_semantics=("parallel",)),
    )(x2)

    out = out.reshape(-1)
    if pad:
        out = out[:total]
    return out.reshape(orig_shape)


if __name__ == "__main__":
    key = jax.random.PRNGKey(0)
    # Activation-like NCHW tensor with values well outside [0, 1] so that both
    # the clamp and the quantization paths are exercised.
    x = 1.5 * jax.random.normal(key, (2, 4, 16, 16), jnp.float32)

    y = jax.block_until_ready(clamp_q(x))

    # Pure-JAX reference of Clamp_q_.forward
    ref = jnp.floor(jnp.clip(x, 0.0, 1.0) * Q_LEVEL) / Q_LEVEL

    assert y.shape == x.shape and y.dtype == x.dtype
    assert bool(jnp.allclose(y, ref, atol=1e-6, rtol=0.0))
    print("KERNEL_OK")
</pallas_src>

<mosaic_0001>
module attributes {stable_mosaic.version = 11 : i64} {
  func.func @_clamp_q_kernel(%arg0: i32, %arg1: memref<8x512xf32, #tpu.memory_space<vmem>>, %arg2: memref<8x512xf32, #tpu.memory_space<vmem>>) attributes {dimension_semantics = [#tpu.dimension_semantics<parallel>], iteration_bounds = array<i64: 1>, scalar_prefetch = 0 : i64, scratch_operands = 0 : i64, tpu.core_type = #tpu.core_type<tc>, window_params = [{transform_indices = @transform_0, window_bounds = array<i64: 8, 512>}, {transform_indices = @transform_1, window_bounds = array<i64: 8, 512>}]} {
    %c0 = arith.constant 0 : index
    %c0_0 = arith.constant 0 : index
    %0 = vector.load %arg1[%c0, %c0_0] : memref<8x512xf32, #tpu.memory_space<vmem>>, vector<8x512xf32>
    %cst = arith.constant 0.000000e+00 : f32
    %cst_1 = arith.constant 1.000000e+00 : f32
    %1 = vector.broadcast %cst : f32 to vector<8x512xf32>
    %2 = arith.maximumf %1, %0 : vector<8x512xf32>
    %3 = vector.broadcast %cst_1 : f32 to vector<8x512xf32>
    %4 = arith.minimumf %3, %2 : vector<8x512xf32>
    %cst_2 = arith.constant 6.000000e+00 : f32
    %5 = vector.broadcast %cst_2 : f32 to vector<8x512xf32>
    %6 = arith.mulf %4, %5 : vector<8x512xf32>
    %7 = math.floor %6 : vector<8x512xf32>
    %cst_3 = arith.constant 6.000000e+00 : f32
    %8 = vector.broadcast %cst_3 : f32 to vector<8x512xf32>
    %9 = arith.divf %7, %8 : vector<8x512xf32>
    %c0_4 = arith.constant 0 : index
    %c0_5 = arith.constant 0 : index
    %10 = vector.load %arg2[%c0_4, %c0_5] : memref<8x512xf32, #tpu.memory_space<vmem>>, vector<8x512xf32>
    tpu.vector_store %arg2[%c0_4, %c0_5], %9 {strides = array<i32>} : memref<8x512xf32, #tpu.memory_space<vmem>>, vector<8x512xf32>,
    return
  }
  func.func @transform_0(%arg0: i32) -> (i32, i32) {
    %c0_i32 = arith.constant 0 : i32
    %c0_i32_0 = arith.constant 0 : i32
    return %arg0, %c0_i32 : i32, i32
  }
  func.func @transform_1(%arg0: i32) -> (i32, i32) {
    %c0_i32 = arith.constant 0 : i32
    %c0_i32_0 = arith.constant 0 : i32
    return %arg0, %c0_i32 : i32, i32
  }
}

</mosaic_0001>

<bundles_post_ra>
// kernel: tpu_custom_call.1
= control target key start
LH: loop header
LB: loop body
LE: loop exit
PB: predicated region body
PF: predicated region fallthrough
CT: control target
= control target key end

     0   :  { %6 = vsyncpa [#allocation3], 0  ;;  %s151_s0 = inlined_call_operand.hbm [shape: f32[8,512], index: 0, kind: input, shape index: {}]   ;;  %s152_s1 = inlined_call_operand.hbm [shape: f32[8,512], index: 1, kind: output, shape index: {}]  }
   0x1   :  { %7 = vsyncpa [#allocation4], 0  ;;  %s13_s8 = sshll.u32 %s151_s0, 4  ;;  %s132_s9 = smov [#allocation2]   ;;  %s14_s8 = int_to_ptr.hbm [resolvable:$true] %s13_s8 }
   0x2   :  { %s15_s10 = sshll.u32 %s132_s9, 4  ;;  %s16_s10 = int_to_ptr.vmem [resolvable:$true] %s15_s10 }
   0x3   :  { %18 = dma.hbm_to_vmem [thread:$0]  %s14_s8, 512, %s16_s10, [#allocation3]  }
   0x4   :  { %128 = dma.done.wait [#allocation3], 512  }
   0x5   :  { %129 = vsyncadd [#allocation3], 4294966784  ;;  %v133_v0 = vmov 6.0   ;;  %v23_v2 = vld [vmem:[#allocation2] sm:$0xff]  ;;  %v24_v3 = vld [vmem:[#allocation2 + $0x8] sm:$0xff]  ;;  %s134_s0 = smov [#allocation5]  }
   0x6   :  { %78 = vrcp.f32 %v133_v0  ;;  %v25_v4 = vld [vmem:[#allocation2 + $0x10] sm:$0xff]  ;;  %v27_v5 = vmax.f32 %v23_v2, 0.0  ;;  %v28_v7 = vmax.f32 %v24_v3, 0.0  ;;  %v26_v8 = vld [vmem:[#allocation2 + $0x18] sm:$0xff]  ;;  %s63_s11 = sshll.u32 %s134_s0, 4  ;;  %s65_s14 = sshll.u32 %s152_s1, 4  ;;  %s64_s11 = int_to_ptr.vmem [resolvable:$true] %s63_s11  ;;  %s66_s14 = int_to_ptr.hbm [resolvable:$true] %s65_s14 }
   0x7   :  { %v29_v9 = vmax.f32 %v25_v4, 0.0  ;;  %v30_v10 = vmax.f32 %v26_v8, 0.0 }
   0x8   :  { %v31_v11 = vmin.f32 %v27_v5, 1.0  ;;  %v32_v13 = vmin.f32 %v28_v7, 1.0 }
   0x9   :  { %v33_v14 = vmin.f32 %v29_v9, 1.0  ;;  %v34_v15 = vmin.f32 %v30_v10, 1.0 }
   0xa   :  { %v35_v16 = vmul.f32 6.0, %v31_v11  ;;  %v36_v18 = vmul.f32 6.0, %v32_v13 }
   0xb   :  { %v37_v19 = vmul.f32 6.0, %v33_v14  ;;  %v38_v20 = vmul.f32 6.0, %v34_v15 }
   0xc   :  { %v79_v1 = vpop.eup %78  ;;  %v39_v21 = vfloor.f32 %v35_v16  ;;  %v40_v23 = vfloor.f32 %v36_v18 }
   0xd   :  { %v44_v6 = vmul.f32 6.0, %v79_v1  ;;  %vm48_vm0 = vweird.f32 %v79_v1  ;;  %v41_v24 = vfloor.f32 %v37_v19  ;;  %v42_v25 = vfloor.f32 %v38_v20 }
   0xf   :  { %v45_v12 = vsub.f32 1.0, %v44_v6 }
  0x11   :  { %v46_v17 = vmul.f32 %v79_v1, %v45_v12 }
  0x13   :  { %v47_v22 = vadd.f32 %v79_v1, %v46_v17 }
  0x15   :  { %v49_v26 = vsel %vm48_vm0, %v79_v1, %v47_v22 }
  0x16   :  { %v50_v27 = vmul.f32 %v49_v26, %v39_v21  ;;  %v51_v28 = vmul.f32 %v49_v26, %v40_v23  ;;  %v52_v29 = vmul.f32 %v49_v26, %v41_v24  ;;  %v53_v30 = vmul.f32 %v49_v26, %v42_v25 }
  0x18   :  { %54 = vst [vmem:[#allocation5] sm:$0xff] %v50_v27 }
  0x19   :  { %55 = vst [vmem:[#allocation5 + $0x8] sm:$0xff] %v51_v28 }
  0x1a   :  { %56 = vst [vmem:[#allocation5 + $0x10] sm:$0xff] %v52_v29 }
  0x1b   :  { %57 = vst [vmem:[#allocation5 + $0x18] sm:$0xff] %v53_v30 }
  0x1c   :  { %68 = dma.vmem_to_hbm [thread:$0]  %s64_s11, 512, %s66_s14, [#allocation4]  }
  0x1d   :  { %130 = dma.done.wait [#allocation4], 512  }
  0x1e   :  { %131 = vsyncadd [#allocation4], 4294966784 }
  0x1f   :  { %73 = vsyncpa [#allocation3], 1 }
  0x20   :  { %74 = vsyncpa [#allocation4], 1 }

</bundles_post_ra>
